<compile_context>
chip_gen: v7x
topology: tpu7x:2x2x1
jax: 0.10.0
libtpu: 0.0.40
codegen_flags: <defaults>
</compile_context>

<pallas_src>
import functools

import jax
import jax.numpy as jnp
import numpy as np
from jax.experimental import pallas as pl
from jax.experimental.pallas import tpu as pltpu

N_FFT = 512
WIN_LENGTH = 128
HOP = 10
N_FREQ_FULL = N_FFT // 2 + 1                      # 257
N_FREQ_KEEP = int(20 / 100 * N_FREQ_FULL + 10)    # 61
K_PAD = 64                                        # kept freqs padded to 64 (sublane mult of 8)

# Window support: hann(128) zero-padded centered to n_fft=512 -> nonzero taps j in [192, 320).
# Polyphase (hop=10) slabs covering that support: original q = 19..31 -> 13 slabs, origin 190.
J_LO = HOP * (((N_FFT - WIN_LENGTH) // 2) // HOP)     # 190
J_HI = (N_FFT + WIN_LENGTH) // 2                      # 320
NQ_EFF = -(-(J_HI - J_LO) // HOP)                     # 13 polyphase slabs
R = 16                                                # polyphase rows, padded 10 -> 16 (aligned)
K_ROWS = NQ_EFF * R                                   # 208 contraction rows
HALO = 16                                             # >= NQ_EFF - 1 = 12, kept 8-aligned
MAX_TF = 1024                                         # frames per tile cap (multiple of 256)


def _hann_padded_np():
    # torch.hann_window(128, periodic=True), zero-padded (centered) to n_fft, float64.
    n = np.arange(WIN_LENGTH, dtype=np.float64)
    win_short = 0.5 - 0.5 * np.cos(2.0 * np.pi * n / WIN_LENGTH)
    lpad = (N_FFT - WIN_LENGTH) // 2
    win = np.zeros(N_FFT, dtype=np.float64)
    win[lpad:lpad + WIN_LENGTH] = win_short
    return win


def _build_fused_weight_np():
    # Fused, transposed, polyphase-scattered windowed DFT basis over the window support only,
    # with the 1/1000 output scale folded in.  Shape (128, K_ROWS=208):
    #   rows [0, 61)    -> real part for kept bins, rows [61, 64) zero
    #   rows [64, 125)  -> imag part for kept bins, rows [125,128) zero
    #   column 16*q' + r -> time tap j = J_LO + 10*q' + r (r < 10), other columns zero.
    win = _hann_padded_np()
    j = np.arange(N_FFT, dtype=np.float64)[:, None]
    k = np.arange(N_FREQ_KEEP, dtype=np.float64)[None, :]
    ang = 2.0 * np.pi * j * k / N_FFT
    wr = win[:, None] * np.cos(ang) * 1e-3                # (512, 61), /1000 folded in
    wi = -win[:, None] * np.sin(ang) * 1e-3                # (512, 61)
    wt = np.zeros((2 * K_PAD, K_ROWS), dtype=np.float64)
    js = np.arange(J_LO, J_HI)                             # taps 190..319 (others are zero-window)
    cols = R * ((js - J_LO) // HOP) + ((js - J_LO) % HOP)  # (130,)
    wt[:N_FREQ_KEEP, cols] = wr[js].T
    wt[K_PAD:K_PAD + N_FREQ_KEEP, cols] = wi[js].T
    return wt.astype(np.float32)


_WT = _build_fused_weight_np()


def _spec_kernel(x_ref, wt_ref, o_ref, fr_ref, *, tf):
    # x_ref : (1, 1, R, tf+HALO)   shifted polyphase slab for this (batch*chan, frame-tile)
    # wt_ref: (2*K_PAD, K_ROWS)    fused [real ; imag] windowed-DFT weight (incl. 1/1000 scale)
    # o_ref : (1, K_PAD, tf)       clipped |X|/1000, frames-last (lane-dense store)
    # fr_ref: VMEM (K_ROWS, tf)    scratch: frames^T over the window support only
    slab = x_ref[0, 0]                                   # (R, tf+HALO)
    for q in range(NQ_EFF):                               # 13 unrolled, aligned 16-row stores
        fr_ref[R * q:R * (q + 1), :] = slab[:, q:q + tf]
    acc = jnp.dot(wt_ref[...], fr_ref[...],
                  preferred_element_type=jnp.float32)     # (128, tf), one dense MXU matmul
    sq = acc * acc
    mag = jnp.sqrt(sq[:K_PAD, :] + sq[K_PAD:, :])         # (K_PAD, tf)
    # clip(.,0,10000)/1000 == min(mag_scaled, 10); lower clip dropped since |X| >= 0.
    o_ref[0] = jnp.minimum(mag, 10.0)


def transform10s(x):
    n, c, t = x.shape
    b = n * c
    pad = N_FFT // 2
    xp = jnp.pad(x.astype(jnp.float32), ((0, 0), (0, 0), (pad, pad)), mode="reflect")
    xp = xp.reshape(b, -1)
    L = t + 2 * pad
    n_frames = 1 + (L - N_FFT) // HOP                     # = 1 + t // 10

    # Frame-tile size: big enough to amortize per-step overhead, capped so we don't compute
    # lots of padded frames for short clips.  Multiple of 256 keeps MXU N-tiling clean.
    tf = min(MAX_TF, 256 * pl.cdiv(n_frames, 256))
    n_tiles = pl.cdiv(n_frames, tf)
    m_cols = n_tiles * tf + HALO                          # polyphase columns the kernel reads

    # Cheap wrapper glue: shifted polyphase view x2t[b, r, m] = xp[b, 10*m + J_LO + r],
    # covering only the window support.  No 51x frame blowup in HBM.
    x_shift = xp[:, J_LO:]
    need = HOP * m_cols
    cur = x_shift.shape[1]
    if need > cur:
        x_shift = jnp.pad(x_shift, ((0, 0), (0, need - cur)))
    else:
        x_shift = x_shift[:, :need]                       # tail only feeds cropped frames
    x2t = jnp.transpose(x_shift.reshape(b, m_cols, HOP), (0, 2, 1))   # (b, 10, m_cols)
    x2t = jnp.pad(x2t, ((0, 0), (0, R - HOP), (0, 0)))                # (b, 16, m_cols)
    # Per-tile halo'ed slabs via static slices (~1.06x of the small polyphase input).
    x3 = jnp.stack(
        [x2t[:, :, ft * tf: ft * tf + tf + HALO] for ft in range(n_tiles)],
        axis=1)                                                        # (b, n_tiles, 16, tf+HALO)

    wt = jnp.asarray(_WT)                                              # (128, 208)

    out = pl.pallas_call(
        functools.partial(_spec_kernel, tf=tf),
        out_shape=jax.ShapeDtypeStruct((b, K_PAD, n_tiles * tf), jnp.float32),
        grid_spec=pltpu.PrefetchScalarGridSpec(
            num_scalar_prefetch=0,
            grid=(b, n_tiles),
            in_specs=[
                pl.BlockSpec((1, 1, R, tf + HALO), lambda i, j: (i, j, 0, 0)),
                pl.BlockSpec((2 * K_PAD, K_ROWS), lambda i, j: (0, 0)),   # weight stays resident
            ],
            out_specs=pl.BlockSpec((1, K_PAD, tf), lambda i, j: (i, 0, j)),
            scratch_shapes=[pltpu.VMEM((K_ROWS, tf), jnp.float32)],
        ),
        compiler_params=pltpu.CompilerParams(
            dimension_semantics=("parallel", "parallel")),
    )(x3, wt)

    # (b, 64, n_tiles*tf) -> (N, C, 61, n_frames); freq is already the leading image axis,
    # so no full-output transpose is needed.
    return out[:, :N_FREQ_KEEP, :n_frames].reshape(n, c, N_FREQ_KEEP, n_frames)


def _reference(x):
    # Pure-JAX reference (rfft) matching torchaudio Spectrogram + the module body.
    pad = N_FFT // 2
    xp = jnp.pad(x, ((0, 0), (0, 0), (pad, pad)), mode="reflect")
    t = x.shape[-1]
    n_frames = 1 + t // HOP
    idx = jnp.arange(n_frames)[:, None] * HOP + jnp.arange(N_FFT)[None, :]
    win = jnp.asarray(_hann_padded_np(), dtype=jnp.float32)
    frames = xp[:, :, idx] * win
    spec = jnp.abs(jnp.fft.rfft(frames, n=N_FFT, axis=-1))            # (N, C, NF, 257)
    img = jnp.clip(spec, 0.0, 10000.0) / 1000.0
    img = jnp.transpose(img, (0, 1, 3, 2))                            # (N, C, 257, NF)
    return img[:, :, :N_FREQ_KEEP, :]


if __name__ == "__main__":
    key = jax.random.PRNGKey(0)
    # T must exceed n_fft//2 = 256 so reflect padding is valid (same constraint as torch).
    N, C, T = 2, 4, 400
    x = jax.random.normal(key, (N, C, T), dtype=jnp.float32)

    out = jax.block_until_ready(jax.jit(transform10s)(x))

    assert out.shape == (N, C, N_FREQ_KEEP, 1 + T // HOP), out.shape
    ref = _reference(x)
    np.testing.assert_allclose(np.asarray(out), np.asarray(ref), rtol=1e-3, atol=1e-3)
    print("KERNEL_OK")
</pallas_src>

<mosaic_0001>
module attributes {stable_mosaic.version = 11 : i64} {
  func.func @_spec_kernel(%arg0: i32, %arg1: i32, %arg2: memref<1x1x16x272xf32, #tpu.memory_space<vmem>>, %arg3: memref<128x208xf32, #tpu.memory_space<vmem>>, %arg4: memref<1x64x256xf32, #tpu.memory_space<vmem>>, %arg5: memref<208x256xf32, #tpu.memory_space<vmem>>) attributes {dimension_semantics = [#tpu.dimension_semantics<parallel>, #tpu.dimension_semantics<parallel>], iteration_bounds = array<i64: 8, 1>, scalar_prefetch = 0 : i64, scratch_operands = 1 : i64, tpu.core_type = #tpu.core_type<tc>, window_params = [{transform_indices = @transform_0, window_bounds = array<i64: 1, 1, 16, 272>}, {pipeline_mode = #tpu.pipeline_mode<synchronous>, transform_indices = @transform_1, window_bounds = array<i64: 128, 208>}, {transform_indices = @transform_2, window_bounds = array<i64: 1, 64, 256>}]} {
    %c0 = arith.constant 0 : index
    %c0_0 = arith.constant 0 : index
    %c0_1 = arith.constant 0 : index
    %c0_2 = arith.constant 0 : index
    %0 = vector.load %arg2[%c0, %c0_0, %c0_1, %c0_2] : memref<1x1x16x272xf32, #tpu.memory_space<vmem>>, vector<1x1x16x272xf32>
    %1 = vector.shape_cast %0 : vector<1x1x16x272xf32> to vector<16x272xf32>
    %2 = vector.extract_strided_slice %1 {offsets = [0, 0], sizes = [16, 256], strides = [1, 1]} : vector<16x272xf32> to vector<16x256xf32>
    %c0_3 = arith.constant 0 : index
    %c0_4 = arith.constant 0 : index
    %3 = vector.load %arg5[%c0_3, %c0_4] : memref<208x256xf32, #tpu.memory_space<vmem>>, vector<16x256xf32>
    tpu.vector_store %arg5[%c0_3, %c0_4], %2 {strides = array<i32>} : memref<208x256xf32, #tpu.memory_space<vmem>>, vector<16x256xf32>,
    %4 = vector.extract_strided_slice %1 {offsets = [0, 1], sizes = [16, 256], strides = [1, 1]} : vector<16x272xf32> to vector<16x256xf32>
    %c16 = arith.constant 16 : index
    %c0_5 = arith.constant 0 : index
    %5 = vector.load %arg5[%c16, %c0_5] : memref<208x256xf32, #tpu.memory_space<vmem>>, vector<16x256xf32>
    tpu.vector_store %arg5[%c16, %c0_5], %4 {strides = array<i32>} : memref<208x256xf32, #tpu.memory_space<vmem>>, vector<16x256xf32>,
    %6 = vector.extract_strided_slice %1 {offsets = [0, 2], sizes = [16, 256], strides = [1, 1]} : vector<16x272xf32> to vector<16x256xf32>
    %c32 = arith.constant 32 : index
    %c0_6 = arith.constant 0 : index
    %7 = vector.load %arg5[%c32, %c0_6] : memref<208x256xf32, #tpu.memory_space<vmem>>, vector<16x256xf32>
    tpu.vector_store %arg5[%c32, %c0_6], %6 {strides = array<i32>} : memref<208x256xf32, #tpu.memory_space<vmem>>, vector<16x256xf32>,
    %8 = vector.extract_strided_slice %1 {offsets = [0, 3], sizes = [16, 256], strides = [1, 1]} : vector<16x272xf32> to vector<16x256xf32>
    %c48 = arith.constant 48 : index
    %c0_7 = arith.constant 0 : index
    %9 = vector.load %arg5[%c48, %c0_7] : memref<208x256xf32, #tpu.memory_space<vmem>>, vector<16x256xf32>
    tpu.vector_store %arg5[%c48, %c0_7], %8 {strides = array<i32>} : memref<208x256xf32, #tpu.memory_space<vmem>>, vector<16x256xf32>,
    %10 = vector.extract_strided_slice %1 {offsets = [0, 4], sizes = [16, 256], strides = [1, 1]} : vector<16x272xf32> to vector<16x256xf32>
    %c64 = arith.constant 64 : index
    %c0_8 = arith.constant 0 : index
    %11 = vector.load %arg5[%c64, %c0_8] : memref<208x256xf32, #tpu.memory_space<vmem>>, vector<16x256xf32>
    tpu.vector_store %arg5[%c64, %c0_8], %10 {strides = array<i32>} : memref<208x256xf32, #tpu.memory_space<vmem>>, vector<16x256xf32>,
    %12 = vector.extract_strided_slice %1 {offsets = [0, 5], sizes = [16, 256], strides = [1, 1]} : vector<16x272xf32> to vector<16x256xf32>
    %c80 = arith.constant 80 : index
    %c0_9 = arith.constant 0 : index
    %13 = vector.load %arg5[%c80, %c0_9] : memref<208x256xf32, #tpu.memory_space<vmem>>, vector<16x256xf32>
    tpu.vector_store %arg5[%c80, %c0_9], %12 {strides = array<i32>} : memref<208x256xf32, #tpu.memory_space<vmem>>, vector<16x256xf32>,
    %14 = vector.extract_strided_slice %1 {offsets = [0, 6], sizes = [16, 256], strides = [1, 1]} : vector<16x272xf32> to vector<16x256xf32>
    %c96 = arith.constant 96 : index
    %c0_10 = arith.constant 0 : index
    %15 = vector.load %arg5[%c96, %c0_10] : memref<208x256xf32, #tpu.memory_space<vmem>>, vector<16x256xf32>
    tpu.vector_store %arg5[%c96, %c0_10], %14 {strides = array<i32>} : memref<208x256xf32, #tpu.memory_space<vmem>>, vector<16x256xf32>,
    %16 = vector.extract_strided_slice %1 {offsets = [0, 7], sizes = [16, 256], strides = [1, 1]} : vector<16x272xf32> to vector<16x256xf32>
    %c112 = arith.constant 112 : index
    %c0_11 = arith.constant 0 : index
    %17 = vector.load %arg5[%c112, %c0_11] : memref<208x256xf32, #tpu.memory_space<vmem>>, vector<16x256xf32>
    tpu.vector_store %arg5[%c112, %c0_11], %16 {strides = array<i32>} : memref<208x256xf32, #tpu.memory_space<vmem>>, vector<16x256xf32>,
    %18 = vector.extract_strided_slice %1 {offsets = [0, 8], sizes = [16, 256], strides = [1, 1]} : vector<16x272xf32> to vector<16x256xf32>
    %c128 = arith.constant 128 : index
    %c0_12 = arith.constant 0 : index
    %19 = vector.load %arg5[%c128, %c0_12] : memref<208x256xf32, #tpu.memory_space<vmem>>, vector<16x256xf32>
    tpu.vector_store %arg5[%c128, %c0_12], %18 {strides = array<i32>} : memref<208x256xf32, #tpu.memory_space<vmem>>, vector<16x256xf32>,
    %20 = vector.extract_strided_slice %1 {offsets = [0, 9], sizes = [16, 256], strides = [1, 1]} : vector<16x272xf32> to vector<16x256xf32>
    %c144 = arith.constant 144 : index
    %c0_13 = arith.constant 0 : index
    %21 = vector.load %arg5[%c144, %c0_13] : memref<208x256xf32, #tpu.memory_space<vmem>>, vector<16x256xf32>
    tpu.vector_store %arg5[%c144, %c0_13], %20 {strides = array<i32>} : memref<208x256xf32, #tpu.memory_space<vmem>>, vector<16x256xf32>,
    %22 = vector.extract_strided_slice %1 {offsets = [0, 10], sizes = [16, 256], strides = [1, 1]} : vector<16x272xf32> to vector<16x256xf32>
    %c160 = arith.constant 160 : index
    %c0_14 = arith.constant 0 : index
    %23 = vector.load %arg5[%c160, %c0_14] : memref<208x256xf32, #tpu.memory_space<vmem>>, vector<16x256xf32>
    tpu.vector_store %arg5[%c160, %c0_14], %22 {strides = array<i32>} : memref<208x256xf32, #tpu.memory_space<vmem>>, vector<16x256xf32>,
    %24 = vector.extract_strided_slice %1 {offsets = [0, 11], sizes = [16, 256], strides = [1, 1]} : vector<16x272xf32> to vector<16x256xf32>
    %c176 = arith.constant 176 : index
    %c0_15 = arith.constant 0 : index
    %25 = vector.load %arg5[%c176, %c0_15] : memref<208x256xf32, #tpu.memory_space<vmem>>, vector<16x256xf32>
    tpu.vector_store %arg5[%c176, %c0_15], %24 {strides = array<i32>} : memref<208x256xf32, #tpu.memory_space<vmem>>, vector<16x256xf32>,
    %26 = vector.extract_strided_slice %1 {offsets = [0, 12], sizes = [16, 256], strides = [1, 1]} : vector<16x272xf32> to vector<16x256xf32>
    %c192 = arith.constant 192 : index
    %c0_16 = arith.constant 0 : index
    %27 = vector.load %arg5[%c192, %c0_16] : memref<208x256xf32, #tpu.memory_space<vmem>>, vector<16x256xf32>
    tpu.vector_store %arg5[%c192, %c0_16], %26 {strides = array<i32>} : memref<208x256xf32, #tpu.memory_space<vmem>>, vector<16x256xf32>,
    %c0_17 = arith.constant 0 : index
    %c0_18 = arith.constant 0 : index
    %28 = vector.load %arg3[%c0_17, %c0_18] : memref<128x208xf32, #tpu.memory_space<vmem>>, vector<128x208xf32>
    %c0_19 = arith.constant 0 : index
    %c0_20 = arith.constant 0 : index
    %29 = vector.load %arg5[%c0_19, %c0_20] : memref<208x256xf32, #tpu.memory_space<vmem>>, vector<208x256xf32>
    %cst = arith.constant dense<0.000000e+00> : vector<128x256xf32>
    %30 = tpu.matmul %28, %29, %cst {dimension_numbers = #tpu.dot_dimension_numbers<[1], [0], [0], [1], [0, 0, 1, 1], [], []>} : vector<128x208xf32>, vector<208x256xf32>, vector<128x256xf32> -> vector<128x256xf32>
    %31 = arith.mulf %30, %30 : vector<128x256xf32>
    %32 = vector.extract_strided_slice %31 {offsets = [0, 0], sizes = [64, 256], strides = [1, 1]} : vector<128x256xf32> to vector<64x256xf32>
    %33 = vector.extract_strided_slice %31 {offsets = [64, 0], sizes = [64, 256], strides = [1, 1]} : vector<128x256xf32> to vector<64x256xf32>
    %34 = arith.addf %32, %33 : vector<64x256xf32>
    %35 = math.sqrt %34 : vector<64x256xf32>
    %cst_21 = arith.constant 1.000000e+01 : f32
    %36 = vector.broadcast %cst_21 : f32 to vector<64x256xf32>
    %37 = arith.minimumf %35, %36 : vector<64x256xf32>
    %c0_22 = arith.constant 0 : index
    %c0_23 = arith.constant 0 : index
    %c0_24 = arith.constant 0 : index
    %38 = vector.load %arg4[%c0_22, %c0_23, %c0_24] : memref<1x64x256xf32, #tpu.memory_space<vmem>>, vector<1x64x256xf32>
    %39 = vector.shape_cast %38 : vector<1x64x256xf32> to vector<64x256xf32>
    %40 = vector.shape_cast %37 : vector<64x256xf32> to vector<1x64x256xf32>
    tpu.vector_store %arg4[%c0_22, %c0_23, %c0_24], %40 {strides = array<i32>} : memref<1x64x256xf32, #tpu.memory_space<vmem>>, vector<1x64x256xf32>,
    return
  }
  func.func @transform_0(%arg0: i32, %arg1: i32) -> (i32, i32, i32, i32) {
    %c0_i32 = arith.constant 0 : i32
    %c0_i32_0 = arith.constant 0 : i32
    %c0_i32_1 = arith.constant 0 : i32
    return %arg0, %arg1, %c0_i32, %c0_i32_0 : i32, i32, i32, i32
  }
  func.func @transform_1(%arg0: i32, %arg1: i32) -> (i32, i32) {
    %c0_i32 = arith.constant 0 : i32
    %c0_i32_0 = arith.constant 0 : i32
    %c0_i32_1 = arith.constant 0 : i32
    return %c0_i32, %c0_i32_0 : i32, i32
  }
  func.func @transform_2(%arg0: i32, %arg1: i32) -> (i32, i32, i32) {
    %c0_i32 = arith.constant 0 : i32
    %c0_i32_0 = arith.constant 0 : i32
    return %arg0, %c0_i32, %arg1 : i32, i32, i32
  }
}

</mosaic_0001>

<bundles_post_ra>
// kernel: transform10s.1
= control target key start
LH: loop header
LB: loop body
LE: loop exit
PB: predicated region body
PF: predicated region fallthrough
CT: control target
= control target key end

     0   :  { %s1478_s9 = smov 0   ;;  %s1480_s10 = smov 0   ;;  %s1793_s0 = inlined_call_operand.vmem [shape: f32[8,1,16,272], index: 0, kind: input, shape index: {}]   ;;  %s1794_s1 = inlined_call_operand.vmem [shape: f32[128,208], index: 1, kind: input, shape index: {}]   ;;  %s1795_s2 = inlined_call_operand.vmem [shape: f32[8,64,256], index: 2, kind: output, shape index: {}]  }
   0x1   :  { %s1482_s11 = smov 0  }
   0x2 LB: > { %s24_s12 = sadd.s32 1, %s1445_s10  ;;  %p1077_p0 = scmp.ge.s32.totalorder %s1449_s11, 1  ;;  %s1449_s11 = sphi %s1482_s11, %s12_s11   ;;  %s1445_s10 = sphi %s1480_s10, %s1797_s10   ;;  %s1441_s9 = sphi %s1478_s9, %s1796_s9  }
   0x3   : > { %p26_p1 = scmp.ge.s32.totalorder %s24_s12, 8  ;;  %p132_p2 = scmp.lt.s32.totalorder %s1449_s11, 9 }
   0x5   : > { %s1799_s12 = smov (%p26_p1, %s24_s12), 0  ;;  %p133_p3 = pnand %p1077_p0, %p132_p2 }
   0x6   : > { %p162_p4 = scmp.lt.s32.totalorder (!%p133_p3), %s1441_s9, 7  ;;  %s1451_s17 = smov (!%p133_p3), 127   ;;  %v498_v11 = vld [vmem:[%s1794_s1 + $0x8] sm:$0xff] (!%p133_p3)  ;;  %vm581_vm0 = vcmask (!%p133_p3), 654336   ;;  %vm209_vm1 = vcmask (!%p133_p3), 1039360   ;;  %vm234_vm2 = vcmask (!%p133_p3), 1031168  }
   0x7   : > { %136 = sbr.rel (%p133_p3) target bundleno = 483 (0x1e3), region = 28  ;;  %s1452_s18 = smov (!%p133_p3), 126   ;;  %v514_v12 = vld [vmem:[%s1794_s1 + $0x88] sm:$0xff] (!%p133_p3)  ;;  %1081 = vmatprep.mubr.msk.f32.mxu0 (!%p133_p3), %vm581_vm0, %v498_v11  ;;  %vm259_vm3 = vcmask (!%p133_p3), 1022976   ;;  %vm284_vm4 = vcmask (!%p133_p3), 1014784   ;;  %vm309_vm5 = vcmask (!%p133_p3), 1006592  }
   0x8   : > { %s1453_s19 = smov (!%p133_p3), 125   ;;  %s1454_s20 = smov (!%p133_p3), 124   ;;  %1089 = vmatprep.mubr.msk.f32.mxu1 (!%p133_p3), %vm581_vm0, %v514_v12  ;;  %vm334_vm6 = vcmask (!%p133_p3), 998400   ;;  %vm359_vm7 = vcmask (!%p133_p3), 990208   ;;  %vm384_vm8 = vcmask (!%p133_p3), 982016   ;;  %vm409_vm9 = vcmask (!%p133_p3), 973824  }
   0x9   : > { %s1455_s21 = smov (!%p133_p3), 123   ;;  %s1456_s22 = smov (!%p133_p3), 122   ;;  %vm434_vm10 = vcmask (!%p133_p3), 965632   ;;  %vm459_vm11 = vcmask (!%p133_p3), 957440   ;;  %vm484_vm12 = vcmask (!%p133_p3), 949248  }
   0xa   : > { %s1457_s23 = smov (!%p133_p3), 121   ;;  %s1458_s24 = smov (!%p133_p3), 120  }
   0xb   : > { %s1459_s25 = smov (!%p133_p3), 119   ;;  %s1460_s26 = smov (!%p133_p3), 118  }
   0xc   : > { %s1461_s27 = smov (!%p133_p3), 117   ;;  %s1462_s4 = smov (!%p133_p3), 116  }
   0xe   : > { %s1801_s9 = smov (!%p162_p4, %s1441_s9), 7 }
   0xf   : > { %s1178_s13 = smul.u32 48, %s1801_s9 }
  0x11   : > { %s170_s16 = scalar_lea.vmem %s1793_s0, %s1178_s13 }
  0x12   : > { %v182_v0 = vld [vmem:[%s170_s16 + $0x8] sm:$0xff]  ;;  %v183_v1 = vld [vmem:[%s170_s16 + $0x10] sm:$0xff]  ;;  %v181_v2 = vld [vmem:[%s170_s16] sm:$0xff] }
  0x13   : > { %v1215_v3 = vpack.i.bf16 %v183_v1, %v182_v0  ;;  %v184_v4 = vld [vmem:[%s170_s16 + $0x18] sm:$0xff]  ;;  %v185_v5 = vld [vmem:[%s170_s16 + $0x20] sm:$0xff]  ;;  %v186_v6 = vld [vmem:[%s170_s16 + $0x28] sm:$0xff] }
  0x14   : > { %v1225_v7 = vpack.i.bf16 %v184_v4, %v181_v2  ;;  %v1220_v8 = vpack.i.bf16 %v186_v6, %v185_v5  ;;  %v1100_v9 = vpack.c.bf16 %v185_v5, %v182_v0  ;;  %v1102_v10 = vpack.c.bf16 %v184_v4, %v181_v2 }
  0x15   : > { %1216 = vrot.lane.b32.xlu0 %v1215_v3, %s1451_s17 }
  0x16   : > { %1226 = vrot.lane.b32.xlu1 %v1225_v7, %s1451_s17  ;;  %1101 = vmatprep.subr.bf16.mxu0 %v1100_v9 }
  0x17   : > { %1152 = vmatprep.subr.bf16.mxu1 %v1100_v9  ;;  %1103 = vmatpush1.bf16.msra.mxu0 %v1102_v10 }
  0x18   : > { %1165 = vmatpush1.bf16.msra.mxu1 %v1102_v10 }
  0x19   : > { %1221 = vrot.lane.b32.xlu0 %v1220_v8, %s1451_s17 }
  0x1a   : > { %1231 = vrot.lane.b32.xlu1 %v1215_v3, %s1452_s18 }
  0x1d   : > { %1236 = vrot.lane.b32.xlu0 %v1220_v8, %s1452_s18 }
  0x1e   : > { %1241 = vrot.lane.b32.xlu1 %v1225_v7, %s1452_s18 }
  0x21   : > { %1246 = vrot.lane.b32.xlu0 %v1215_v3, %s1453_s19 }
  0x22   : > { %1251 = vrot.lane.b32.xlu1 %v1220_v8, %s1453_s19 }
  0x25   : > { %1256 = vrot.lane.b32.xlu0 %v1225_v7, %s1453_s19 }
  0x26   : > { %1261 = vrot.lane.b32.xlu1 %v1215_v3, %s1454_s20 }
  0x29   : > { %1266 = vrot.lane.b32.xlu0 %v1220_v8, %s1454_s20 }
  0x2a   : > { %1271 = vrot.lane.b32.xlu1 %v1225_v7, %s1454_s20 }
  0x2d   : > { %1276 = vrot.lane.b32.xlu0 %v1215_v3, %s1455_s21 }
  0x2e   : > { %1281 = vrot.lane.b32.xlu1 %v1220_v8, %s1455_s21 }
  0x31   : > { %1286 = vrot.lane.b32.xlu0 %v1225_v7, %s1455_s21  ;;  %s1099_s21 = sshll.u32 %s1801_s9, 7 }
  0x32   : > { %1291 = vrot.lane.b32.xlu1 %v1215_v3, %s1456_s22 }
  0x35   : > { %1296 = vrot.lane.b32.xlu0 %v1220_v8, %s1456_s22 }
  0x36   : > { %1301 = vrot.lane.b32.xlu1 %v1225_v7, %s1456_s22 }
  0x39   : > { %1306 = vrot.lane.b32.xlu0 %v1215_v3, %s1457_s23 }
  0x3a   : > { %1311 = vrot.lane.b32.xlu1 %v1220_v8, %s1457_s23 }
  0x3d   : > { %1316 = vrot.lane.b32.xlu0 %v1225_v7, %s1457_s23  ;;  %s1665_s23 = scalar_lea.vmem %s1795_s2, %s1099_s21 }
  0x3e   : > { %1321 = vrot.lane.b32.xlu1 %v1215_v3, %s1458_s24 }
  0x41   : > { %1326 = vrot.lane.b32.xlu0 %v1220_v8, %s1458_s24 }
  0x42   : > { %1331 = vrot.lane.b32.xlu1 %v1225_v7, %s1458_s24 }
  0x45   : > { %1336 = vrot.lane.b32.xlu0 %v1215_v3, %s1459_s25 }
  0x46   : > { %1341 = vrot.lane.b32.xlu1 %v1220_v8, %s1459_s25 }
  0x49   : > { %1346 = vrot.lane.b32.xlu0 %v1225_v7, %s1459_s25 }
  0x4a   : > { %1351 = vrot.lane.b32.xlu1 %v1215_v3, %s1460_s26 }
  0x4d   : > { %1356 = vrot.lane.b32.xlu0 %v1220_v8, %s1460_s26 }
  0x4e   : > { %1361 = vrot.lane.b32.xlu1 %v1225_v7, %s1460_s26 }
  0x51   : > { %1366 = vrot.lane.b32.xlu0 %v1215_v3, %s1461_s27 }
  0x52   : > { %1371 = vrot.lane.b32.xlu1 %v1220_v8, %s1461_s27 }
  0x55   : > { %1376 = vrot.lane.b32.xlu0 %v1225_v7, %s1461_s27 }
  0x56   : > { %1381 = vrot.lane.b32.xlu1 %v1215_v3, %s1462_s4 }
  0x59   : > { %1386 = vrot.lane.b32.xlu0 %v1220_v8, %s1462_s4 }
  0x5a   : > { %1391 = vrot.lane.b32.xlu1 %v1225_v7, %s1462_s4 }
  0x87   : > { %v1217_v13 = vpop.permute.xlu0 %1216 }
  0x88   : > { %v1227_v14 = vpop.permute.xlu1 %1226  ;;  %v1219_v15 = vunpack.i.h.bf16 %v1217_v13  ;;  %v1218_v16 = vunpack.i.l.bf16 %v1217_v13 }
  0x89   : > { %v1228_v17 = vunpack.i.l.bf16 %v1227_v14  ;;  %v1229_v19 = vunpack.i.h.bf16 %v1227_v14 }
  0x8a   : > { %v211_v23 = vsel %vm209_vm1, %v1218_v16, %v1219_v15 }
  0x8b   : > { %v1222_v18 = vpop.permute.xlu0 %1221  ;;  %v210_v24 = vsel %vm209_vm1, %v1228_v17, %v1218_v16 }
  0x8c   : > { %v1224_v20 = vunpack.i.h.bf16 %v1222_v18  ;;  %v1223_v21 = vunpack.i.l.bf16 %v1222_v18  ;;  %v1232_v22 = vpop.permute.xlu1 %1231 }
  0x8d   : > { %v1234_v25 = vunpack.i.h.bf16 %v1232_v22  ;;  %v1233_v26 = vunpack.i.l.bf16 %v1232_v22 }
  0x8e   : > { %v213_v27 = vsel %vm209_vm1, %v1223_v21, %v1224_v20  ;;  %v212_v28 = vsel %vm209_vm1, %v1229_v19, %v1223_v21 }
  0x8f   : > { %v1237_v29 = vpop.permute.xlu0 %1236  ;;  %v1104_v30 = vpack.c.bf16 %v213_v27, %v211_v23  ;;  %v1106_v31 = vpack.c.bf16 %v212_v28, %v210_v24  ;;  %v236_v37 = vsel %vm234_vm2, %v1233_v26, %v1234_v25 }
  0x90   : > { %v1239_v32 = vunpack.i.h.bf16 %v1237_v29  ;;  %v1238_v33 = vunpack.i.l.bf16 %v1237_v29  ;;  %v1242_v34 = vpop.permute.xlu1 %1241 }
  0x91   : > { %v1244_v35 = vunpack.i.h.bf16 %v1242_v34  ;;  %v1243_v36 = vunpack.i.l.bf16 %v1242_v34  ;;  %1105 = vmatprep.subr.bf16.mxu0 %v1104_v30  ;;  %1153 = vmatprep.subr.bf16.mxu1 %v1104_v30 }
  0x92   : > { %1107 = vmatpush1.bf16.msra.mxu0 %v1106_v31  ;;  %1166 = vmatpush1.bf16.msra.mxu1 %v1106_v31  ;;  %v238_v38 = vsel %vm234_vm2, %v1238_v33, %v1239_v32 }
  0x93   : > { %v1247_v39 = vpop.permute.xlu0 %1246  ;;  %v1108_v40 = vpack.c.bf16 %v238_v38, %v236_v37  ;;  %v235_v41 = vsel %vm234_vm2, %v1243_v36, %v1233_v26  ;;  %v237_v42 = vsel %vm234_vm2, %v1244_v35, %v1238_v33 }
  0x94   : > { %v1249_v43 = vunpack.i.h.bf16 %v1247_v39  ;;  %v1248_v44 = vunpack.i.l.bf16 %v1247_v39  ;;  %v1252_v45 = vpop.permute.xlu1 %1251  ;;  %v1110_v46 = vpack.c.bf16 %v237_v42, %v235_v41 }
  0x95   : > { %v1254_v47 = vunpack.i.h.bf16 %v1252_v45  ;;  %v1253_v48 = vunpack.i.l.bf16 %v1252_v45  ;;  %1109 = vmatprep.subr.bf16.mxu0 %v1108_v40  ;;  %1154 = vmatprep.subr.bf16.mxu1 %v1108_v40 }
  0x96   : > { %1111 = vmatpush1.bf16.msra.mxu0 %v1110_v46  ;;  %1167 = vmatpush1.bf16.msra.mxu1 %v1110_v46  ;;  %v261_v49 = vsel %vm259_vm3, %v1248_v44, %v1249_v43 }
  0x97   : > { %v1257_v50 = vpop.permute.xlu0 %1256  ;;  %v263_v51 = vsel %vm259_vm3, %v1253_v48, %v1254_v47 }
  0x98   : > { %v1259_v52 = vunpack.i.h.bf16 %v1257_v50  ;;  %v1258_v53 = vunpack.i.l.bf16 %v1257_v50  ;;  %v1262_v54 = vpop.permute.xlu1 %1261  ;;  %v1112_v55 = vpack.c.bf16 %v263_v51, %v261_v49 }
  0x99   : > { %v1264_v56 = vunpack.i.h.bf16 %v1262_v54  ;;  %v1263_v57 = vunpack.i.l.bf16 %v1262_v54 }
  0x9a   : > { %1113 = vmatprep.subr.bf16.mxu0 %v1112_v55  ;;  %1155 = vmatprep.subr.bf16.mxu1 %v1112_v55  ;;  %v260_v58 = vsel %vm259_vm3, %v1258_v53, %v1248_v44  ;;  %v262_v59 = vsel %vm259_vm3, %v1259_v52, %v1253_v48 }
  0x9b   : > { %v1267_v60 = vpop.permute.xlu0 %1266  ;;  %v1114_v61 = vpack.c.bf16 %v262_v59, %v260_v58  ;;  %v286_v3 = vsel %vm284_vm4, %v1263_v57, %v1264_v56 }
  0x9c   : > { %v1269_v62 = vunpack.i.h.bf16 %v1267_v60  ;;  %v1268_v63 = vunpack.i.l.bf16 %v1267_v60  ;;  %v1272_v0 = vpop.permute.xlu1 %1271 }
  0x9d   : > { %v1274_v1 = vunpack.i.h.bf16 %v1272_v0  ;;  %v1273_v2 = vunpack.i.l.bf16 %v1272_v0  ;;  %1115 = vmatpush1.bf16.msra.mxu0 %v1114_v61  ;;  %1168 = vmatpush1.bf16.msra.mxu1 %v1114_v61 }
  0x9e   : > { %v288_v4 = vsel %vm284_vm4, %v1268_v63, %v1269_v62 }
  0x9f   : > { %v1277_v5 = vpop.permute.xlu0 %1276  ;;  %v1116_v6 = vpack.c.bf16 %v288_v4, %v286_v3  ;;  %v285_v7 = vsel %vm284_vm4, %v1273_v2, %v1263_v57  ;;  %v287_v8 = vsel %vm284_vm4, %v1274_v1, %v1268_v63 }
  0xa0   : > { %v1279_v9 = vunpack.i.h.bf16 %v1277_v5  ;;  %v1278_v10 = vunpack.i.l.bf16 %v1277_v5  ;;  %v1282_v11 = vpop.permute.xlu1 %1281  ;;  %v1118_v12 = vpack.c.bf16 %v287_v8, %v285_v7 }
  0xa1   : > { %v1284_v13 = vunpack.i.h.bf16 %v1282_v11  ;;  %v1283_v14 = vunpack.i.l.bf16 %v1282_v11  ;;  %1117 = vmatprep.subr.bf16.mxu0 %v1116_v6  ;;  %1156 = vmatprep.subr.bf16.mxu1 %v1116_v6 }
  0xa2   : > { %1119 = vmatpush1.bf16.msra.mxu0 %v1118_v12  ;;  %1169 = vmatpush1.bf16.msra.mxu1 %v1118_v12  ;;  %v311_v15 = vsel %vm309_vm5, %v1278_v10, %v1279_v9 }
  0xa3   : > { %v1287_v16 = vpop.permute.xlu0 %1286  ;;  %v313_v17 = vsel %vm309_vm5, %v1283_v14, %v1284_v13 }
  0xa4   : > { %v1289_v18 = vunpack.i.h.bf16 %v1287_v16  ;;  %v1288_v19 = vunpack.i.l.bf16 %v1287_v16  ;;  %v1292_v20 = vpop.permute.xlu1 %1291  ;;  %v1120_v21 = vpack.c.bf16 %v313_v17, %v311_v15 }
  0xa5   : > { %v1294_v22 = vunpack.i.h.bf16 %v1292_v20  ;;  %v1293_v23 = vunpack.i.l.bf16 %v1292_v20 }
  0xa6   : > { %1121 = vmatprep.subr.bf16.mxu0 %v1120_v21  ;;  %1157 = vmatprep.subr.bf16.mxu1 %v1120_v21  ;;  %v310_v24 = vsel %vm309_vm5, %v1288_v19, %v1278_v10  ;;  %v312_v25 = vsel %vm309_vm5, %v1289_v18, %v1283_v14 }
  0xa7   : > { %v1297_v26 = vpop.permute.xlu0 %1296  ;;  %v1122_v27 = vpack.c.bf16 %v312_v25, %v310_v24  ;;  %v336_v33 = vsel %vm334_vm6, %v1293_v23, %v1294_v22 }
  0xa8   : > { %v1299_v28 = vunpack.i.h.bf16 %v1297_v26  ;;  %v1298_v29 = vunpack.i.l.bf16 %v1297_v26  ;;  %v1302_v30 = vpop.permute.xlu1 %1301 }
  0xa9   : > { %v1304_v31 = vunpack.i.h.bf16 %v1302_v30  ;;  %v1303_v32 = vunpack.i.l.bf16 %v1302_v30  ;;  %1123 = vmatpush1.bf16.msra.mxu0 %v1122_v27  ;;  %1170 = vmatpush1.bf16.msra.mxu1 %v1122_v27 }
  0xaa   : > { %v338_v34 = vsel %vm334_vm6, %v1298_v29, %v1299_v28 }
  0xab   : > { %v1307_v35 = vpop.permute.xlu0 %1306  ;;  %v1124_v36 = vpack.c.bf16 %v338_v34, %v336_v33  ;;  %v335_v37 = vsel %vm334_vm6, %v1303_v32, %v1293_v23  ;;  %v337_v38 = vsel %vm334_vm6, %v1304_v31, %v1298_v29 }
  0xac   : > { %v1309_v39 = vunpack.i.h.bf16 %v1307_v35  ;;  %v1308_v40 = vunpack.i.l.bf16 %v1307_v35  ;;  %v1312_v41 = vpop.permute.xlu1 %1311  ;;  %v1126_v42 = vpack.c.bf16 %v337_v38, %v335_v37 }
  0xad   : > { %v1314_v43 = vunpack.i.h.bf16 %v1312_v41  ;;  %v1313_v44 = vunpack.i.l.bf16 %v1312_v41  ;;  %1125 = vmatprep.subr.bf16.mxu0 %v1124_v36  ;;  %1158 = vmatprep.subr.bf16.mxu1 %v1124_v36 }
  0xae   : > { %1127 = vmatpush1.bf16.msra.mxu0 %v1126_v42  ;;  %1171 = vmatpush1.bf16.msra.mxu1 %v1126_v42  ;;  %v361_v45 = vsel %vm359_vm7, %v1308_v40, %v1309_v39 }
  0xaf   : > { %v1317_v46 = vpop.permute.xlu0 %1316  ;;  %v363_v47 = vsel %vm359_vm7, %v1313_v44, %v1314_v43 }
  0xb0   : > { %v1319_v48 = vunpack.i.h.bf16 %v1317_v46  ;;  %v1318_v49 = vunpack.i.l.bf16 %v1317_v46  ;;  %v1322_v50 = vpop.permute.xlu1 %1321  ;;  %v1128_v51 = vpack.c.bf16 %v363_v47, %v361_v45 }
  0xb1   : > { %v1324_v52 = vunpack.i.h.bf16 %v1322_v50  ;;  %v1323_v53 = vunpack.i.l.bf16 %v1322_v50 }
  0xb2   : > { %1129 = vmatprep.subr.bf16.mxu0 %v1128_v51  ;;  %1159 = vmatprep.subr.bf16.mxu1 %v1128_v51  ;;  %v360_v54 = vsel %vm359_vm7, %v1318_v49, %v1308_v40  ;;  %v362_v55 = vsel %vm359_vm7, %v1319_v48, %v1313_v44 }
  0xb3   : > { %v1327_v56 = vpop.permute.xlu0 %1326  ;;  %v1130_v57 = vpack.c.bf16 %v362_v55, %v360_v54  ;;  %v386_v63 = vsel %vm384_vm8, %v1323_v53, %v1324_v52 }
  0xb4   : > { %v1329_v58 = vunpack.i.h.bf16 %v1327_v56  ;;  %v1328_v59 = vunpack.i.l.bf16 %v1327_v56  ;;  %v1332_v60 = vpop.permute.xlu1 %1331 }
  0xb5   : > { %v1334_v61 = vunpack.i.h.bf16 %v1332_v60  ;;  %v1333_v62 = vunpack.i.l.bf16 %v1332_v60  ;;  %1131 = vmatpush1.bf16.msra.mxu0 %v1130_v57  ;;  %1172 = vmatpush1.bf16.msra.mxu1 %v1130_v57 }
  0xb6   : > { %v388_v0 = vsel %vm384_vm8, %v1328_v59, %v1329_v58 }
  0xb7   : > { %v1337_v1 = vpop.permute.xlu0 %1336  ;;  %v1132_v2 = vpack.c.bf16 %v388_v0, %v386_v63  ;;  %v385_v3 = vsel %vm384_vm8, %v1333_v62, %v1323_v53  ;;  %v387_v4 = vsel %vm384_vm8, %v1334_v61, %v1328_v59 }
  0xb8   : > { %v1339_v5 = vunpack.i.h.bf16 %v1337_v1  ;;  %v1338_v6 = vunpack.i.l.bf16 %v1337_v1  ;;  %v1342_v7 = vpop.permute.xlu1 %1341  ;;  %v1134_v8 = vpack.c.bf16 %v387_v4, %v385_v3  ;;  %v497_v1 = vld [vmem:[%s1794_s1] sm:$0xff]  ;;  %v500_v3 = vld [vmem:[%s1794_s1 + $0x18] sm:$0xff] }
  0xb9   : > { %v1344_v9 = vunpack.i.h.bf16 %v1342_v7  ;;  %v1343_v10 = vunpack.i.l.bf16 %v1342_v7  ;;  %1133 = vmatprep.subr.bf16.mxu0 %v1132_v2  ;;  %1160 = vmatprep.subr.bf16.mxu1 %v1132_v2  ;;  %v513_v2 = vld [vmem:[%s1794_s1 + $0x80] sm:$0xff]  ;;  %v516_v4 = vld [vmem:[%s1794_s1 + $0x98] sm:$0xff]  ;;  %v502_v7 = vld [vmem:[%s1794_s1 + $0x28] sm:$0xff] }
  0xba   : > { %1135 = vmatpush1.bf16.msra.mxu0 %v1134_v8  ;;  %1173 = vmatpush1.bf16.msra.mxu1 %v1134_v8  ;;  %v411_v11 = vsel %vm409_vm9, %v1338_v6, %v1339_v5  ;;  %v499_v5 = vld [vmem:[%s1794_s1 + $0x10] sm:$0xff]  ;;  %v518_v8 = vld [vmem:[%s1794_s1 + $0xa8] sm:$0xff] }
  0xbb   : > { %v1347_v12 = vpop.permute.xlu0 %1346  ;;  %v413_v13 = vsel %vm409_vm9, %v1343_v10, %v1344_v9  ;;  %v501_v9 = vld [vmem:[%s1794_s1 + $0x20] sm:$0xff] }
  0xbc   : > { %v1349_v14 = vunpack.i.h.bf16 %v1347_v12  ;;  %v1348_v15 = vunpack.i.l.bf16 %v1347_v12  ;;  %v1352_v16 = vpop.permute.xlu1 %1351  ;;  %v1136_v17 = vpack.c.bf16 %v413_v13, %v411_v11  ;;  %v504_v11 = vld [vmem:[%s1794_s1 + $0x38] sm:$0xff]  ;;  %v503_v13 = vld [vmem:[%s1794_s1 + $0x30] sm:$0xff] }
  0xbd   : > { %v1354_v18 = vunpack.i.h.bf16 %v1352_v16  ;;  %v1353_v19 = vunpack.i.l.bf16 %v1352_v16  ;;  %v520_v12 = vld [vmem:[%s1794_s1 + $0xb8] sm:$0xff]  ;;  %v522_v16 = vld [vmem:[%s1794_s1 + $0xc8] sm:$0xff] }
  0xbe   : > { %1137 = vmatprep.subr.bf16.mxu0 %v1136_v17  ;;  %1161 = vmatprep.subr.bf16.mxu1 %v1136_v17  ;;  %v410_v20 = vsel %vm409_vm9, %v1348_v15, %v1338_v6  ;;  %v412_v21 = vsel %vm409_vm9, %v1349_v14, %v1343_v10  ;;  %v515_v6 = vld [vmem:[%s1794_s1 + $0x90] sm:$0xff]  ;;  %v517_v10 = vld [vmem:[%s1794_s1 + $0xa0] sm:$0xff]  ;;  %v506_v15 = vld [vmem:[%s1794_s1 + $0x48] sm:$0xff] }
  0xbf   : > { %v1357_v22 = vpop.permute.xlu0 %1356  ;;  %v1138_v23 = vpack.c.bf16 %v412_v21, %v410_v20  ;;  %v436_v29 = vsel %vm434_vm10, %v1353_v19, %v1354_v18  ;;  %v519_v14 = vld [vmem:[%s1794_s1 + $0xb0] sm:$0xff]  ;;  %v505_v17 = vld [vmem:[%s1794_s1 + $0x40] sm:$0xff]  ;;  %v524_v20 = vld [vmem:[%s1794_s1 + $0xd8] sm:$0xff] }
  0xc0   : > { %v1359_v24 = vunpack.i.h.bf16 %v1357_v22  ;;  %v1358_v25 = vunpack.i.l.bf16 %v1357_v22  ;;  %v1362_v26 = vpop.permute.xlu1 %1361  ;;  %v521_v18 = vld [vmem:[%s1794_s1 + $0xc0] sm:$0xff]  ;;  %v507_v21 = vld [vmem:[%s1794_s1 + $0x50] sm:$0xff] }
  0xc1   : > { %v1364_v27 = vunpack.i.h.bf16 %v1362_v26  ;;  %v1363_v28 = vunpack.i.l.bf16 %v1362_v26  ;;  %1139 = vmatpush1.bf16.msra.mxu0 %v1138_v23  ;;  %1174 = vmatpush1.bf16.msra.mxu1 %v1138_v23  ;;  %v523_v22 = vld [vmem:[%s1794_s1 + $0xd0] sm:$0xff]  ;;  %v510_v23 = vld [vmem:[%s1794_s1 + $0x68] sm:$0xff]  ;;  %v525_v26 = vld [vmem:[%s1794_s1 + $0xe0] sm:$0xff] }
  0xc2   : > { %v438_v30 = vsel %vm434_vm10, %v1358_v25, %v1359_v24  ;;  %v526_v24 = vld [vmem:[%s1794_s1 + $0xe8] sm:$0xff] }
  0xc3   : > { %v1367_v31 = vpop.permute.xlu0 %1366  ;;  %v1140_v32 = vpack.c.bf16 %v438_v30, %v436_v29  ;;  %v435_v33 = vsel %vm434_vm10, %v1363_v28, %v1353_v19  ;;  %v437_v34 = vsel %vm434_vm10, %v1364_v27, %v1358_v25  ;;  %v508_v19 = vld [vmem:[%s1794_s1 + $0x58] sm:$0xff]  ;;  %v509_v25 = vld [vmem:[%s1794_s1 + $0x60] sm:$0xff]  ;;  %v511_v29 = vld [vmem:[%s1794_s1 + $0x70] sm:$0xff] }
  0xc4   : > { %v1369_v35 = vunpack.i.h.bf16 %v1367_v31  ;;  %v1368_v36 = vunpack.i.l.bf16 %v1367_v31  ;;  %v1372_v37 = vpop.permute.xlu1 %1371  ;;  %v1142_v38 = vpack.c.bf16 %v437_v34, %v435_v33  ;;  %v512_v27 = vld [vmem:[%s1794_s1 + $0x78] sm:$0xff]  ;;  %v527_v30 = vld [vmem:[%s1794_s1 + $0xf0] sm:$0xff] }
  0xc5   : > { %v1374_v39 = vunpack.i.h.bf16 %v1372_v37  ;;  %v1373_v40 = vunpack.i.l.bf16 %v1372_v37  ;;  %1141 = vmatprep.subr.bf16.mxu0 %v1140_v32  ;;  %1162 = vmatprep.subr.bf16.mxu1 %v1140_v32  ;;  %v528_v28 = vld [vmem:[%s1794_s1 + $0xf8] sm:$0xff] }
  0xc6   : > { %1143 = vmatpush1.bf16.msra.mxu0 %v1142_v38  ;;  %1175 = vmatpush1.bf16.msra.mxu1 %v1142_v38  ;;  %v461_v41 = vsel %vm459_vm11, %v1368_v36, %v1369_v35 }
  0xc7   : > { %v1377_v42 = vpop.permute.xlu0 %1376  ;;  %v463_v43 = vsel %vm459_vm11, %v1373_v40, %v1374_v39 }
  0xc8   : > { %v1379_v44 = vunpack.i.h.bf16 %v1377_v42  ;;  %v1378_v45 = vunpack.i.l.bf16 %v1377_v42  ;;  %v1382_v46 = vpop.permute.xlu1 %1381  ;;  %v1144_v47 = vpack.c.bf16 %v463_v43, %v461_v41 }
  0xc9   : > { %v1384_v48 = vunpack.i.h.bf16 %v1382_v46  ;;  %v1383_v49 = vunpack.i.l.bf16 %v1382_v46 }
  0xca   : > { %1145 = vmatprep.subr.bf16.mxu0 %v1144_v47  ;;  %1163 = vmatprep.subr.bf16.mxu1 %v1144_v47  ;;  %v460_v50 = vsel %vm459_vm11, %v1378_v45, %v1368_v36  ;;  %v462_v51 = vsel %vm459_vm11, %v1379_v44, %v1373_v40 }
  0xcb   : > { %v1387_v52 = vpop.permute.xlu0 %1386  ;;  %v1146_v53 = vpack.c.bf16 %v462_v51, %v460_v50  ;;  %v486_v59 = vsel %vm484_vm12, %v1383_v49, %v1384_v48 }
  0xcc   : > { %v1389_v54 = vunpack.i.h.bf16 %v1387_v52  ;;  %v1388_v55 = vunpack.i.l.bf16 %v1387_v52  ;;  %v1392_v56 = vpop.permute.xlu1 %1391 }
  0xcd   : > { %v1394_v57 = vunpack.i.h.bf16 %v1392_v56  ;;  %v1393_v58 = vunpack.i.l.bf16 %v1392_v56  ;;  %1147 = vmatpush1.bf16.msra.mxu0 %v1146_v53  ;;  %1176 = vmatpush1.bf16.msra.mxu1 %v1146_v53 }
  0xce   : > { %v488_v60 = vsel %vm484_vm12, %v1388_v55, %v1389_v54 }
  0xcf   : > { %v1148_v61 = vpack.c.bf16 %v488_v60, %v486_v59  ;;  %v485_v62 = vsel %vm484_vm12, %v1393_v58, %v1383_v49  ;;  %v487_v63 = vsel %vm484_vm12, %v1394_v57, %v1388_v55 }
  0xd0   : > { %v1150_v0 = vpack.c.bf16 %v487_v63, %v485_v62 }
  0xd1   : > { %1149 = vmatprep.subr.bf16.mxu0 %v1148_v61  ;;  %1164 = vmatprep.subr.bf16.mxu1 %v1148_v61 }
  0xd2   : > { %1151 = vmatpush1.bf16.msra.mxu0 %v1150_v0  ;;  %1177 = vmatpush1.bf16.msra.mxu1 %v1150_v0 }
  0xd5   : > { %695 = vmatmul.mubr.f32.vlgmr.msra.gmra.mrb[0].mxu0 %v497_v1  ;;  %743 = vmatmul.mubr.f32.vlgmr.msra.gmra.mrb[0].mxu1 %v513_v2 }
  0xd6   : > { %1082 = vmatprep.mubr.msk.f32.mxu0 %vm581_vm0, %v500_v3  ;;  %1090 = vmatprep.mubr.msk.f32.mxu1 %vm581_vm0, %v516_v4 }
  0xd9   : > { %701 = vmatmul.mubr.f32.gmra.mrb[2].mxu0 %v499_v5  ;;  %749 = vmatmul.mubr.f32.gmra.mrb[2].mxu1 %v515_v6 }
  0xda   : > { %1083 = vmatprep.mubr.msk.f32.mxu0 %vm581_vm0, %v502_v7  ;;  %1091 = vmatprep.mubr.msk.f32.mxu1 %vm581_vm0, %v518_v8 }
  0xdd   : > { %707 = vmatmul.mubr.f32.gmra.mrb[4].mxu0 %v501_v9  ;;  %755 = vmatmul.mubr.f32.gmra.mrb[4].mxu1 %v517_v10 }
  0xde   : > { %1084 = vmatprep.mubr.msk.f32.mxu0 %vm581_vm0, %v504_v11  ;;  %1092 = vmatprep.mubr.msk.f32.mxu1 %vm581_vm0, %v520_v12 }
  0xe1   : > { %713 = vmatmul.mubr.f32.gmra.mrb[6].mxu0 %v503_v13  ;;  %761 = vmatmul.mubr.f32.gmra.mrb[6].mxu1 %v519_v14 }
  0xe2   : > { %1085 = vmatprep.mubr.msk.f32.mxu0 %vm581_vm0, %v506_v15  ;;  %1093 = vmatprep.mubr.msk.f32.mxu1 %vm581_vm0, %v522_v16 }
  0xe5   : > { %719 = vmatmul.mubr.f32.gmra.mrb[8].mxu0 %v505_v17  ;;  %767 = vmatmul.mubr.f32.gmra.mrb[8].mxu1 %v521_v18 }
  0xe6   : > { %1086 = vmatprep.mubr.msk.f32.mxu0 %vm581_vm0, %v508_v19  ;;  %1094 = vmatprep.mubr.msk.f32.mxu1 %vm581_vm0, %v524_v20 }
  0xe9   : > { %725 = vmatmul.mubr.f32.gmra.mrb[10].mxu0 %v507_v21  ;;  %773 = vmatmul.mubr.f32.gmra.mrb[10].mxu1 %v523_v22 }
  0xea   : > { %1087 = vmatprep.mubr.msk.f32.mxu0 %vm581_vm0, %v510_v23  ;;  %1095 = vmatprep.mubr.msk.f32.mxu1 %vm581_vm0, %v526_v24 }
  0xed   : > { %731 = vmatmul.mubr.f32.gmra.mrb[12].mxu0 %v509_v25  ;;  %779 = vmatmul.mubr.f32.gmra.mrb[12].mxu1 %v525_v26 }
  0xee   : > { %1088 = vmatprep.mubr.msk.f32.mxu0 %vm581_vm0, %v512_v27  ;;  %1096 = vmatprep.mubr.msk.f32.mxu1 %vm581_vm0, %v528_v28 }
  0xf1   : > { %737 = vmatmul.mubr.f32.gmra.mrb[14].mxu0 %v511_v29  ;;  %785 = vmatmul.mubr.f32.gmra.mrb[14].mxu1 %v527_v30 }
 0x1a8   : > { %v696_v31 = vpop.f32.mrb[0].mxu0  ;;  %v744_v32 = vpop.f32.mrb[0].mxu1 }
 0x1a9   : > { %v791_v33 = vmul.f32 %v696_v31, %v696_v31  ;;  %v807_v34 = vmul.f32 %v744_v32, %v744_v32  ;;  %v698_v35 = vpop.f32.mrb[1].mxu0  ;;  %v746_v36 = vpop.f32.mrb[1].mxu1 }
 0x1aa   : > { %v792_v37 = vmul.f32 %v698_v35, %v698_v35  ;;  %v808_v38 = vmul.f32 %v746_v36, %v746_v36 }
 0x1ab   : > { %v823_v39 = vadd.f32 %v807_v34, %v791_v33 }
 0x1ac   : > { %v1634_v40 = vadd.f32 %v808_v38, %v792_v37  ;;  %v702_v41 = vpop.f32.mrb[2].mxu0  ;;  %v750_v42 = vpop.f32.mrb[2].mxu1 }
 0x1ad   : > { %1395 = vrsqrt.f32 %v823_v39  ;;  %v704_v43 = vpop.f32.mrb[3].mxu0  ;;  %v752_v44 = vpop.f32.mrb[3].mxu1  ;;  %v793_v45 = vmul.f32 %v702_v41, %v702_v41  ;;  %v809_v46 = vmul.f32 %v750_v42, %v750_v42  ;;  %vm841_vm13 = vcmp.eq.f32.partialorder %v823_v39, inf }
 0x1ae   : > { %1397 = vrsqrt.f32 %v1634_v40  ;;  %v794_v47 = vmul.f32 %v704_v43, %v704_v43  ;;  %v810_v48 = vmul.f32 %v752_v44, %v752_v44  ;;  %vm843_vm14 = vcmp.eq.f32.partialorder %v823_v39, 0.0 }
 0x1af   : > { %v1637_v51 = vadd.f32 %v809_v46, %v793_v45  ;;  %v844_v6 = vand.u32 2147483648, %v823_v39  ;;  %vm848_vm15 = vcmp.eq.f32.partialorder %v1634_v40, inf  ;;  %vm850_vm0 = vcmp.eq.f32.partialorder %v1634_v40, 0.0 }
 0x1b0   : > { %v708_v49 = vpop.f32.mrb[4].mxu0  ;;  %v756_v50 = vpop.f32.mrb[4].mxu1  ;;  %v1639_v52 = vadd.f32 %v810_v48, %v794_v47  ;;  %v851_v9 = vand.u32 2147483648, %v1634_v40 }
 0x1b1   : > { %v795_v53 = vmul.f32 %v708_v49, %v708_v49  ;;  %v811_v54 = vmul.f32 %v756_v50, %v756_v50  ;;  %v710_v55 = vpop.f32.mrb[5].mxu0  ;;  %v758_v56 = vpop.f32.mrb[5].mxu1  ;;  %1399 = vrsqrt.f32 %v1637_v51  ;;  %vm855_vm1 = vcmp.eq.f32.partialorder %v1637_v51, inf }
 0x1b2   : > { %v796_v57 = vmul.f32 %v710_v55, %v710_v55  ;;  %v812_v58 = vmul.f32 %v758_v56, %v758_v56  ;;  %1401 = vrsqrt.f32 %v1639_v52  ;;  %vm857_vm2 = vcmp.eq.f32.partialorder %v1637_v51, 0.0 }
 0x1b3   : > { %v1643_v61 = vadd.f32 %v811_v54, %v795_v53  ;;  %v858_v18 = vand.u32 2147483648, %v1637_v51  ;;  %vm862_vm3 = vcmp.eq.f32.partialorder %v1639_v52, inf  ;;  %vm864_vm4 = vcmp.eq.f32.partialorder %v1639_v52, 0.0 }
 0x1b4   : > { %v714_v59 = vpop.f32.mrb[6].mxu0  ;;  %v762_v60 = vpop.f32.mrb[6].mxu1  ;;  %v1645_v62 = vadd.f32 %v812_v58, %v796_v57  ;;  %v865_v25 = vand.u32 2147483648, %v1639_v52 }
 0x1b5   : > { %v797_v63 = vmul.f32 %v714_v59, %v714_v59  ;;  %v813_v0 = vmul.f32 %v762_v60, %v762_v60  ;;  %v716_v1 = vpop.f32.mrb[7].mxu0  ;;  %v764_v2 = vpop.f32.mrb[7].mxu1  ;;  %1403 = vrsqrt.f32 %v1643_v61  ;;  %vm869_vm5 = vcmp.eq.f32.partialorder %v1643_v61, inf }
 0x1b6   : > { %v798_v3 = vmul.f32 %v716_v1, %v716_v1  ;;  %v814_v4 = vmul.f32 %v764_v2, %v764_v2  ;;  %1405 = vrsqrt.f32 %v1645_v62  ;;  %vm871_vm6 = vcmp.eq.f32.partialorder %v1643_v61, 0.0 }
 0x1b7   : > { %v1396_v5 = vpop.eup %1395  ;;  %v1656_v13 = vadd.f32 %v813_v0, %v797_v63  ;;  %v872_v38 = vand.u32 2147483648, %v1643_v61  ;;  %vm876_vm7 = vcmp.eq.f32.partialorder %v1645_v62, inf  ;;  %vm878_vm8 = vcmp.eq.f32.partialorder %v1645_v62, 0.0 }
 0x1b8   : > { %v1398_v7 = vpop.eup %1397  ;;  %v840_v8 = vmul.f32 %v1396_v5, %v823_v39  ;;  %v720_v10 = vpop.f32.mrb[8].mxu0  ;;  %v1658_v14 = vadd.f32 %v814_v4, %v798_v3  ;;  %v879_v47 = vand.u32 2147483648, %v1645_v62 }
 0x1b9   : > { %v768_v11 = vpop.f32.mrb[8].mxu1  ;;  %v847_v12 = vmul.f32 %v1398_v7, %v1634_v40  ;;  %v722_v15 = vpop.f32.mrb[9].mxu0  ;;  %v799_v19 = vmul.f32 %v720_v10, %v720_v10  ;;  %1407 = vrsqrt.f32 %v1656_v13  ;;  %vm883_vm9 = vcmp.eq.f32.partialorder %v1656_v13, inf }
 0x1ba   : > { %v770_v16 = vpop.f32.mrb[9].mxu1  ;;  %v842_v17 = vsel %vm841_vm13, %v823_v39, %v840_v8  ;;  %v815_v20 = vmul.f32 %v768_v11, %v768_v11  ;;  %1409 = vrsqrt.f32 %v1658_v14  ;;  %v800_v30 = vmul.f32 %v722_v15, %v722_v15 }
 0x1bb   : > { %v845_v21 = vsel %vm843_vm14, %v844_v6, %v842_v17  ;;  %v849_v22 = vsel %vm848_vm15, %v1634_v40, %v847_v12  ;;  %v1400_v28 = vpop.eup %1399  ;;  %v816_v36 = vmul.f32 %v770_v16, %v770_v16  ;;  %vm885_vm10 = vcmp.eq.f32.partialorder %v1656_v13, 0.0 }
 0x1bc   : > { %v951_v23 = vmin.f32 %v845_v21, 10.0  ;;  %v852_v24 = vsel %vm850_vm0, %v851_v9, %v849_v22  ;;  %v726_v26 = vpop.f32.mrb[10].mxu0  ;;  %v774_v27 = vpop.f32.mrb[10].mxu1  ;;  %v854_v34 = vmul.f32 %v1400_v28, %v1637_v51  ;;  %v1682_v35 = vadd.f32 %v815_v20, %v799_v19 }
 0x1bd   : > { %v952_v29 = vmin.f32 %v852_v24, 10.0  ;;  %v728_v31 = vpop.f32.mrb[11].mxu0  ;;  %v776_v32 = vpop.f32.mrb[11].mxu1  ;;  %v801_v39 = vmul.f32 %v726_v26, %v726_v26  ;;  %v817_v40 = vmul.f32 %v774_v27, %v774_v27  ;;  %v1699_v48 = vadd.f32 %v816_v36, %v800_v30 }
 0x1be   : > { %v1402_v33 = vpop.eup %1401  ;;  %967 = vst [vmem:[%s1665_s23] sm:$0xff] %v951_v23  ;;  %v856_v41 = vsel %vm855_vm1, %v1637_v51, %v854_v34  ;;  %1411 = vrsqrt.f32 %v1682_v35  ;;  %vm890_vm11 = vcmp.eq.f32.partialorder %v1658_v14, inf  ;;  %v802_v3 = vmul.f32 %v728_v31, %v728_v31 }
 0x1bf   : > { %968 = vst [vmem:[%s1665_s23 + $0x8] sm:$0xff] %v952_v29  ;;  %v861_v37 = vmul.f32 %v1402_v33, %v1639_v52  ;;  %v1404_v44 = vpop.eup %1403  ;;  %v859_v45 = vsel %vm857_vm2, %v858_v18, %v856_v41  ;;  %v1704_v56 = vadd.f32 %v817_v40, %v801_v39  ;;  %1413 = vrsqrt.f32 %v1699_v48 }
 0x1c0   : > { %v732_v42 = vpop.f32.mrb[12].mxu0  ;;  %v780_v43 = vpop.f32.mrb[12].mxu1  ;;  %v953_v54 = vmin.f32 %v859_v45, 10.0  ;;  %v868_v51 = vmul.f32 %v1404_v44, %v1643_v61  ;;  %vm892_vm12 = vcmp.eq.f32.partialorder %v1658_v14, 0.0  ;;  %v818_v10 = vmul.f32 %v776_v32, %v776_v32 }
 0x1c1   : > { %v863_v46 = vsel %vm862_vm3, %v1639_v52, %v861_v37  ;;  %v734_v49 = vpop.f32.mrb[13].mxu0  ;;  %v782_v50 = vpop.f32.mrb[13].mxu1  ;;  %v886_v52 = vand.u32 2147483648, %v1656_v13  ;;  %1415 = vrsqrt.f32 %v1704_v56  ;;  %v803_v11 = vmul.f32 %v732_v42, %v732_v42 }
 0x1c2   : > { %v1406_v53 = vpop.eup %1405  ;;  %v866_v55 = vsel %vm864_vm4, %v865_v25, %v863_v46  ;;  %969 = vst [vmem:[%s1665_s23 + $0x10] sm:$0xff] %v953_v54  ;;  %v870_v59 = vsel %vm869_vm5, %v1643_v61, %v868_v51  ;;  %v819_v12 = vmul.f32 %v780_v43, %v780_v43  ;;  %v804_v17 = vmul.f32 %v734_v49, %v734_v49 }
 0x1c3   : > { %v954_v57 = vmin.f32 %v866_v55, 10.0  ;;  %v875_v58 = vmul.f32 %v1406_v53, %v1645_v62  ;;  %v1408_v0 = vpop.eup %1407  ;;  %v873_v1 = vsel %vm871_vm6, %v872_v38, %v870_v59  ;;  %v893_v19 = vand.u32 2147483648, %v1658_v14 }
 0x1c4   : > { %v738_v60 = vpop.f32.mrb[14].mxu0  ;;  %v786_v63 = vpop.f32.mrb[14].mxu1  ;;  %v955_v6 = vmin.f32 %v873_v1, 10.0  ;;  %v882_v8 = vmul.f32 %v1408_v0, %v1656_v13  ;;  %v834_v20 = vadd.f32 %v818_v10, %v802_v3  ;;  %v1736_v21 = vadd.f32 %v819_v12, %v803_v11 }
 0x1c5   : > { %970 = vst [vmem:[%s1665_s23 + $0x18] sm:$0xff] %v954_v57  ;;  %v877_v2 = vsel %vm876_vm7, %v1645_v62, %v875_v58  ;;  %v740_v4 = vpop.f32.mrb[15].mxu0  ;;  %v788_v5 = vpop.f32.mrb[15].mxu1  ;;  %v820_v62 = vmul.f32 %v782_v50, %v782_v50  ;;  %vm897_vm13 = vcmp.eq.f32.partialorder %v1682_v35, inf  ;;  %v900_v27 = vand.u32 2147483648, %v1682_v35 }
 0x1c6   : > { %v880_v7 = vsel %vm878_vm8, %v879_v47, %v877_v2  ;;  %v1410_v61 = vpop.eup %1409  ;;  %971 = vst [vmem:[%s1665_s23 + $0x20] sm:$0xff] %v955_v6  ;;  %v884_v15 = vsel %vm883_vm9, %v1656_v13, %v882_v8  ;;  %1417 = vrsqrt.f32 %v834_v20  ;;  %v805_v29 = vmul.f32 %v738_v60, %v738_v60 }
 0x1c7   : > { %v956_v9 = vmin.f32 %v880_v7, 10.0  ;;  %v889_v16 = vmul.f32 %v1410_v61, %v1658_v14  ;;  %v887_v18 = vsel %vm885_vm10, %v886_v52, %v884_v15  ;;  %v1742_v25 = vadd.f32 %v820_v62, %v804_v17 }
 0x1c8   : > { %v1412_v22 = vpop.eup %1411  ;;  %v957_v23 = vmin.f32 %v887_v18, 10.0  ;;  %1419 = vrsqrt.f32 %v1736_v21  ;;  %v821_v30 = vmul.f32 %v786_v63, %v786_v63  ;;  %vm899_vm14 = vcmp.eq.f32.partialorder %v1682_v35, 0.0 }
 0x1c9   : > { %972 = vst [vmem:[%s1665_s23 + $0x28] sm:$0xff] %v956_v9  ;;  %v891_v24 = vsel %vm890_vm11, %v1658_v14, %v889_v16  ;;  %v896_v26 = vmul.f32 %v1412_v22, %v1682_v35  ;;  %v1414_v31 = vpop.eup %1413  ;;  %vm904_vm15 = vcmp.eq.f32.partialorder %v1699_v48, inf  ;;  %vm906_vm0 = vcmp.eq.f32.partialorder %v1699_v48, 0.0 }
 0x1ca   : > { %v894_v13 = vsel %vm892_vm12, %v893_v19, %v891_v24  ;;  %973 = vst [vmem:[%s1665_s23 + $0x30] sm:$0xff] %v957_v23  ;;  %v903_v34 = vmul.f32 %v1414_v31, %v1699_v48  ;;  %v907_v36 = vand.u32 2147483648, %v1699_v48  ;;  %1421 = vrsqrt.f32 %v1742_v25 }
 0x1cb   : > { %v958_v28 = vmin.f32 %v894_v13, 10.0  ;;  %v898_v32 = vsel %vm897_vm13, %v1682_v35, %v896_v26  ;;  %v1416_v14 = vpop.eup %1415  ;;  %vm911_vm1 = vcmp.eq.f32.partialorder %v1704_v56, inf  ;;  %v914_v35 = vand.u32 2147483648, %v1704_v56 }
 0x1cc   : > { %v901_v33 = vsel %vm899_vm14, %v900_v27, %v898_v32  ;;  %v910_v38 = vmul.f32 %v1416_v14, %v1704_v56  ;;  %v905_v39 = vsel %vm904_vm15, %v1699_v48, %v903_v34  ;;  %v837_v40 = vadd.f32 %v821_v30, %v805_v29 }
 0x1cd   : > { %974 = vst [vmem:[%s1665_s23 + $0x38] sm:$0xff] %v958_v28  ;;  %v959_v37 = vmin.f32 %v901_v33, 10.0  ;;  %v806_v41 = vmul.f32 %v740_v4, %v740_v4  ;;  %v822_v42 = vmul.f32 %v788_v5, %v788_v5  ;;  %v908_v43 = vsel %vm906_vm0, %v907_v36, %v905_v39 }
 0x1ce   : > { %v912_v44 = vsel %vm911_vm1, %v1704_v56, %v910_v38  ;;  %vm913_vm2 = vcmp.eq.f32.partialorder %v1704_v56, 0.0  ;;  %v960_v45 = vmin.f32 %v908_v43, 10.0  ;;  %1423 = vrsqrt.f32 %v837_v40 }
 0x1cf   : > { %975 = vst [vmem:[%s1665_s23 + $0x40] sm:$0xff] %v959_v37  ;;  %v915_v46 = vsel %vm913_vm2, %v914_v35, %v912_v44  ;;  %v838_v49 = vadd.f32 %v822_v42, %v806_v41  ;;  %vm918_vm3 = vcmp.eq.f32.partialorder %v834_v20, inf  ;;  %v921_v55 = vand.u32 2147483648, %v834_v20 }
 0x1d0   : > { %v961_v47 = vmin.f32 %v915_v46, 10.0  ;;  %976 = vst [vmem:[%s1665_s23 + $0x48] sm:$0xff] %v960_v45  ;;  %v1418_v50 = vpop.eup %1417  ;;  %vm920_vm4 = vcmp.eq.f32.partialorder %v834_v20, 0.0  ;;  %vm925_vm5 = vcmp.eq.f32.partialorder %v1736_v21, inf  ;;  %v928_v56 = vand.u32 2147483648, %v1736_v21 }
 0x1d1   : > { %1425 = vrsqrt.f32 %v838_v49  ;;  %v917_v54 = vmul.f32 %v1418_v50, %v834_v20  ;;  %vm927_vm6 = vcmp.eq.f32.partialorder %v1736_v21, 0.0  ;;  %vm932_vm7 = vcmp.eq.f32.partialorder %v1742_v25, inf }
 0x1d2   : > { %977 = vst [vmem:[%s1665_s23 + $0x50] sm:$0xff] %v961_v47  ;;  %v1420_v53 = vpop.eup %1419  ;;  %v935_v0 = vand.u32 2147483648, %v1742_v25  ;;  %vm934_vm8 = vcmp.eq.f32.partialorder %v1742_v25, 0.0  ;;  %vm939_vm9 = vcmp.eq.f32.partialorder %v837_v40, inf  ;;  %v942_v7 = vand.u32 2147483648, %v837_v40 }
 0x1d3   : > { %v924_v48 = vmul.f32 %v1420_v53, %v1736_v21  ;;  %v919_v57 = vsel %vm918_vm3, %v834_v20, %v917_v54  ;;  %vm941_vm10 = vcmp.eq.f32.partialorder %v837_v40, 0.0  ;;  %vm946_vm11 = vcmp.eq.f32.partialorder %v838_v49, inf }
 0x1d4   : > { %v1422_v51 = vpop.eup %1421  ;;  %v922_v58 = vsel %vm920_vm4, %v921_v55, %v919_v57  ;;  %v949_v12 = vand.u32 2147483648, %v838_v49  ;;  %vm948_vm12 = vcmp.eq.f32.partialorder %v838_v49, 0.0 }
 0x1d5   : > { %v926_v59 = vsel %vm925_vm5, %v1736_v21, %v924_v48  ;;  %v931_v52 = vmul.f32 %v1422_v51, %v1742_v25  ;;  %v962_v60 = vmin.f32 %v922_v58, 10.0 }
 0x1d6   : > { %v929_v63 = vsel %vm927_vm6, %v928_v56, %v926_v59 }
 0x1d7   : > { %v963_v1 = vmin.f32 %v929_v63, 10.0  ;;  %v933_v2 = vsel %vm932_vm7, %v1742_v25, %v931_v52  ;;  %978 = vst [vmem:[%s1665_s23 + $0x58] sm:$0xff] %v962_v60 }
 0x1d8   : > { %v1424_v3 = vpop.eup %1423  ;;  %v936_v4 = vsel %vm934_vm8, %v935_v0, %v933_v2 }
 0x1d9   : > { %979 = vst [vmem:[%s1665_s23 + $0x60] sm:$0xff] %v963_v1  ;;  %v964_v5 = vmin.f32 %v936_v4, 10.0  ;;  %v938_v6 = vmul.f32 %v1424_v3, %v837_v40 }
 0x1db   : > { %v1426_v8 = vpop.eup %1425  ;;  %980 = vst [vmem:[%s1665_s23 + $0x68] sm:$0xff] %v964_v5  ;;  %v940_v61 = vsel %vm939_vm9, %v837_v40, %v938_v6 }
 0x1dc   : > { %v943_v9 = vsel %vm941_vm10, %v942_v7, %v940_v61  ;;  %v945_v10 = vmul.f32 %v1426_v8, %v838_v49 }
 0x1dd   : > { %v965_v11 = vmin.f32 %v943_v9, 10.0 }
 0x1de   : > { %v947_v15 = vsel %vm946_vm11, %v838_v49, %v945_v10 }
 0x1df   : > { %981 = vst [vmem:[%s1665_s23 + $0x70] sm:$0xff] %v965_v11  ;;  %v950_v16 = vsel %vm948_vm12, %v949_v12, %v947_v15 }
 0x1e0   : > { %v966_v17 = vmin.f32 %v950_v16, 10.0 }
 0x1e2   : > { %982 = vst [vmem:[%s1665_s23 + $0x78] sm:$0xff] %v966_v17 }
 0x1e3 PF: > { %s12_s11 = sadd.s32 1, %s1449_s11   ;;  %s1796_s9 = smov %s1445_s10 }
 0x1e4   : > { %p9_p5 = scmp.ge.s32.totalorder %s12_s11, 10   ;;  %s1797_s10 = smov %s1799_s12 }
 0x1e6   :  { %11 = sbr.rel (!%p9_p5) target bundleno = 2 (0x2), region = 58 }

</bundles_post_ra>
